<compile_context>
chip_gen: v7x
topology: tpu7x:2x2x1
jax: 0.10.0
libtpu: 0.0.40
codegen_flags: <defaults>
</compile_context>

<pallas_src>
import functools

import jax
import jax.numpy as jnp
from jax import lax
from jax.experimental import pallas as pl
from jax.experimental.pallas import tpu as pltpu


def _round_up(x, m):
    return ((x + m - 1) // m) * m


# ----------------------------------------------------------------------------
# Plain-JAX glue: sampling / grouping (data-dependent gathers)
# ----------------------------------------------------------------------------
def square_distance(src, dst):
    # src [B,N,3], dst [B,M,3] -> [B,N,M]
    dist = -2.0 * jnp.einsum("bnc,bmc->bnm", src, dst)
    dist += jnp.sum(src ** 2, axis=-1)[:, :, None]
    dist += jnp.sum(dst ** 2, axis=-1)[:, None, :]
    return dist


def farthest_point_sample(xyz, npoint):
    # xyz [B,N,3] -> idx [B,npoint]; lax.fori_loop avoids an unrolled trace.
    B, N, _ = xyz.shape
    batch_idx = jnp.arange(B)

    def body(i, carry):
        distance, farthest, centroids = carry
        centroids = centroids.at[:, i].set(farthest)
        centroid = xyz[batch_idx, farthest, :][:, None, :]            # [B,1,3]
        dist = jnp.sum((xyz - centroid) ** 2, axis=-1)                # [B,N]
        distance = jnp.minimum(distance, dist)
        farthest = jnp.argmax(distance, axis=-1).astype(jnp.int32)
        return distance, farthest, centroids

    distance0 = jnp.full((B, N), 1e10, dtype=jnp.float32)
    farthest0 = jnp.zeros((B,), dtype=jnp.int32)       # deterministic start
    centroids0 = jnp.zeros((B, npoint), dtype=jnp.int32)
    _, _, centroids = lax.fori_loop(0, npoint, body,
                                    (distance0, farthest0, centroids0))
    return centroids                                                   # [B,npoint]


def index_points(points, idx):
    # points [B,N,C], idx [B,S] -> [B,S,C]
    return jnp.take_along_axis(points, idx[:, :, None], axis=1)


def index_points_group(points, idx):
    # points [B,N,C], idx [B,S,K] -> [B,S,K,C]
    B, S, K = idx.shape
    C = points.shape[-1]
    flat = idx.reshape(B, S * K)
    out = jnp.take_along_axis(points, flat[:, :, None], axis=1)
    return out.reshape(B, S, K, C)


def query_ball_point(radius, nsample, xyz, new_xyz):
    # xyz [B,N,3], new_xyz [B,S,3] -> group_idx [B,S,nsample]
    # top_k over a masked index key instead of a full sort over N.
    B, N, _ = xyz.shape
    S = new_xyz.shape[1]
    sqrdists = square_distance(new_xyz, xyz)                           # [B,S,N]
    idx = jnp.arange(N, dtype=jnp.int32)
    # in-radius point i -> key -i (bigger key == smaller index); out-of-radius -> -N
    keys = jnp.where(sqrdists <= radius ** 2, -idx, jnp.int32(-N))     # [B,S,N]
    top_keys, _ = lax.top_k(keys, nsample)                             # descending
    group_idx = -top_keys                                              # ascending indices; N == empty
    group_first = jnp.broadcast_to(group_idx[:, :, :1], (B, S, nsample))
    group_idx = jnp.where(group_idx == N, group_first, group_idx)
    return group_idx.astype(jnp.int32)


# ----------------------------------------------------------------------------
# Pallas kernel: shared-MLP (1x1 conv chain, BN+bias folded, ReLU)
#                + running max over K (K chunked on an "arbitrary" grid axis)
# ----------------------------------------------------------------------------
def _mlp_maxpool_kernel(num_layers, kc, tm, x_ref, *rest):
    """x_ref: [kc, tm, c_in_pad] bf16 (K-chunk of the slab)
    rest: num_layers folded-weight refs (bf16), o_ref [tm, c_out_pad] bf16,
          acc_ref scratch [tm, c_out_pad] f32 (running max over K-chunks)."""
    w_refs = rest[:num_layers]
    o_ref = rest[num_layers]
    acc_ref = rest[num_layers + 1]

    kb = pl.program_id(1)
    c_in = x_ref.shape[-1]
    # tm is a multiple of 32, so merging (kc, tm) is sublane-tile aligned
    # (bf16 tiles are (16,128)): no relayout copy.
    h = x_ref[...].reshape(kc * tm, c_in)                              # bf16
    for j in range(num_layers):
        w = w_refs[j][...]                                             # bf16
        # bias is folded into w via the propagated ones-channel -> only the
        # ReLU stays on the VPU; accumulation is f32 on the MXU.
        acc = jnp.dot(h, w, preferred_element_type=jnp.float32)
        acc = jnp.maximum(acc, 0.0)
        h = acc.astype(jnp.bfloat16) if j < num_layers - 1 else acc

    # chunk max over the kc neighbours of this step: short, contiguous,
    # sublane-aligned (tm, Cout_pad) row slices -> pure VPU.
    pooled = h[0:tm, :]
    for k in range(1, kc):
        pooled = jnp.maximum(pooled, h[k * tm:(k + 1) * tm, :])

    @pl.when(kb == 0)
    def _init():
        acc_ref[...] = pooled

    @pl.when(kb != 0)
    def _update():
        acc_ref[...] = jnp.maximum(acc_ref[...], pooled)

    @pl.when(kb == pl.num_programs(1) - 1)
    def _store():
        o_ref[...] = acc_ref[...].astype(o_ref.dtype)                  # bf16 writeback


def _fold_params(weights, biases, c_in, c_in_pad, c_out_pad):
    """Fold the per-layer bias into the weight matrix via a propagated
    ones-channel.  Input slab has a constant-1 channel at index c_in; every
    intermediate layer re-emits a ones column so the next layer's bias row
    multiplies 1.  Last layer is padded to c_out_pad lanes."""
    num_layers = len(weights)
    folded = []
    prev_dim = c_in_pad
    ones_idx = c_in
    for j in range(num_layers):
        w = weights[j].astype(jnp.float32)            # [cin_j, cout_j]
        b = biases[j].astype(jnp.float32)             # [cout_j]
        cin_j, cout_j = w.shape
        last = (j == num_layers - 1)
        out_dim = c_out_pad if last else _round_up(cout_j + 1, 8)
        wf = jnp.zeros((prev_dim, out_dim), jnp.float32)
        wf = wf.at[:cin_j, :cout_j].set(w)
        wf = wf.at[ones_idx, :cout_j].set(b)          # bias row (ones channel)
        if not last:
            wf = wf.at[ones_idx, cout_j].set(1.0)     # propagate ones channel
        folded.append(wf.astype(jnp.bfloat16))
        prev_dim = out_dim
        ones_idx = cout_j
    return folded


def _pick_vmem_limit():
    # v5e/v6e have 128 MiB VMEM per core, v7x has 64 MiB.  Leave headroom for
    # Mosaic internal scratch; fall back to a v7x-safe value if the query fails.
    try:
        cap = int(pltpu.get_tpu_info().vmem_capacity_bytes)
    except Exception:
        cap = 64 * 1024 * 1024
    return min(int(cap * 0.75), 100 * 1024 * 1024)


def msg_mlp_maxpool(grouped, weights, biases, tm_target=512):
    """grouped: [B, S, K, Cin] f32.  Returns pooled features [B, S, Clast] f32."""
    B, S, K, c_in = grouped.shape
    rows = B * S
    num_layers = len(weights)
    c_last = weights[-1].shape[1]

    c_in_pad = _round_up(c_in + 1, 8)        # +1: folded-bias ones channel
    c_out_pad = _round_up(c_last, 128)       # lane-dense output block (unmasked vst)

    # K is chunked onto an "arbitrary" grid axis: per-step input block is only
    # (kc, tm, c_in_pad), so VMEM use is independent of the full K.
    kc = K if K < 8 else 8
    K_pad = _round_up(K, kc)
    k_blocks = K_pad // kc

    folded = _fold_params(weights, biases, c_in, c_in_pad, c_out_pad)

    # ---- tm selection: 32-aligned, K-aware VMEM budget (128-lane rule: a
    # c_in_pad=8 slab still occupies a full 128-lane tile per row in VMEM). ---
    vmem_limit = _pick_vmem_limit()
    budget = int(vmem_limit * 0.8)
    max_inter = max(_round_up(w.shape[1], 128) for w in folded)
    wts_bytes = sum(_round_up(w.shape[0], 16) * _round_up(w.shape[1], 128) * 2
                    for w in folded)

    def vmem_est(tm_):
        in_blk = kc * tm_ * 128 * 2           # bf16 input block, lanes padded to 128
        out_blk = tm_ * c_out_pad * 2         # bf16 output block
        scr = tm_ * c_out_pad * 4             # f32 running-max scratch
        inter = 2 * kc * tm_ * max_inter * 4  # ~2 live f32 intermediates
        return 2 * in_blk + 2 * out_blk + scr + inter + 2 * wts_bytes

    tm = min(tm_target, _round_up(rows, 32))
    while tm > 32 and vmem_est(tm) > budget:
        tm = max(32, _round_up(tm // 2, 32))
    # >= 2 row blocks whenever rows allow, so both v7x TensorCores get work.
    while tm > 32 and rows > 32 and _round_up(rows, tm) // tm < 2:
        tm = max(32, _round_up(tm // 2, 32))
    rows_pad = _round_up(rows, tm)

    # ---- layout: cast to bf16 BEFORE the relayout (halves HBM traffic),
    # K slowest -> [K, B*S, Cin], ones channel appended for the bias fold. ----
    g = grouped.astype(jnp.bfloat16)
    x = jnp.transpose(g, (2, 0, 1, 3)).reshape(K, rows, c_in)
    parts = [x, jnp.ones((K, rows, 1), jnp.bfloat16)]
    if c_in_pad > c_in + 1:
        parts.append(jnp.zeros((K, rows, c_in_pad - c_in - 1), jnp.bfloat16))
    x = jnp.concatenate(parts, axis=-1)                                # [K, rows, c_in_pad]
    if rows_pad > rows:
        x = jnp.pad(x, ((0, 0), (0, rows_pad - rows), (0, 0)))
    if K_pad > K:
        # replicate the last real neighbour: duplicates never change a max.
        x = jnp.pad(x, ((0, K_pad - K), (0, 0), (0, 0)), mode="edge")

    in_specs = [pl.BlockSpec((kc, tm, c_in_pad), lambda i, k: (k, i, 0))]
    args = [x]
    for w in folded:
        in_specs.append(pl.BlockSpec(w.shape, lambda i, k: (0, 0)))
        args.append(w)

    flops = 2 * rows_pad * K_pad * sum(w.shape[0] * w.shape[1] for w in folded)
    bytes_accessed = (x.size * 2 + rows_pad * c_out_pad * 2
                      + sum(w.size * 2 for w in folded))

    kernel = functools.partial(_mlp_maxpool_kernel, num_layers, kc, tm)
    out = pl.pallas_call(
        kernel,
        out_shape=jax.ShapeDtypeStruct((rows_pad, c_out_pad), jnp.bfloat16),
        grid=(rows_pad // tm, k_blocks),
        in_specs=in_specs,
        out_specs=pl.BlockSpec((tm, c_out_pad), lambda i, k: (i, 0)),
        scratch_shapes=[pltpu.VMEM((tm, c_out_pad), jnp.float32)],
        compiler_params=pltpu.CompilerParams(
            dimension_semantics=("parallel", "arbitrary"),
            vmem_limit_bytes=vmem_limit),
        cost_estimate=pl.CostEstimate(
            flops=flops, transcendentals=0, bytes_accessed=bytes_accessed),
    )(*args)
    return out[:rows, :c_last].astype(jnp.float32).reshape(B, S, c_last)


# ----------------------------------------------------------------------------
# Module parameters (deterministic synthetic init, BN folded into conv)
# ----------------------------------------------------------------------------
def init_msg_params(key, in_channel, mlp_list, eps=1e-5):
    """Per-scale lists of (weights [Cin,Cout], biases [Cout]) with eval-mode
    BatchNorm (gamma=1, beta=0, mean=0, var=1) folded in."""
    params = []
    bn_scale = 1.0 / jnp.sqrt(1.0 + eps)    # gamma / sqrt(running_var + eps)
    for mlp in mlp_list:
        ws, bs = [], []
        last = in_channel + 3
        for out_ch in mlp:
            key, k1, k2 = jax.random.split(key, 3)
            w = jax.random.normal(k1, (last, out_ch), jnp.float32) * 0.1
            b = jax.random.normal(k2, (out_ch,), jnp.float32) * 0.05
            ws.append(w * bn_scale)          # folded BN scale
            bs.append(b * bn_scale)          # folded BN shift (mean=0, beta=0)
            last = out_ch
        params.append((ws, bs))
    return params


# ----------------------------------------------------------------------------
# Forward pass (matches PointNetSetAbstractionMsg.forward)
# ----------------------------------------------------------------------------
def pointnet_sa_msg_forward(xyz, points, params, npoint, radius_list, nsample_list):
    """
    xyz:    [B, 3, N]   point positions (channel-first, like PyTorch)
    points: [B, D, N]   point features  (channel-first) or None
    Returns: new_xyz [B, 3, S], new_points_concat [B, sum(mlp[-1]), S]
    """
    xyz_t = jnp.transpose(xyz, (0, 2, 1)).astype(jnp.float32)          # [B,N,3]
    points_t = None
    if points is not None:
        points_t = jnp.transpose(points, (0, 2, 1)).astype(jnp.float32)  # [B,N,D]
    B, N, _ = xyz_t.shape
    S = npoint

    fps_idx = farthest_point_sample(xyz_t, S)                          # [B,S]
    new_xyz = index_points(xyz_t, fps_idx)                             # [B,S,3]

    new_points_list = []
    for i, radius in enumerate(radius_list):
        K = nsample_list[i]
        group_idx = query_ball_point(radius, K, xyz_t, new_xyz)        # [B,S,K]
        grouped_xyz = index_points_group(xyz_t, group_idx)             # [B,S,K,3]
        grouped_xyz = grouped_xyz - new_xyz[:, :, None, :]
        if points_t is not None:
            grouped_points = jnp.concatenate(
                [index_points_group(points_t, group_idx), grouped_xyz], axis=-1)
        else:
            grouped_points = grouped_xyz                               # [B,S,K,D+3]

        ws, bs = params[i]
        feat = msg_mlp_maxpool(grouped_points, ws, bs)                 # [B,S,Clast]
        new_points_list.append(feat)

    new_xyz_out = jnp.transpose(new_xyz, (0, 2, 1))                    # [B,3,S]
    new_points_concat = jnp.transpose(
        jnp.concatenate(new_points_list, axis=-1), (0, 2, 1))          # [B,sumC,S]
    return new_xyz_out, new_points_concat


# ----------------------------------------------------------------------------
# Demo
# ----------------------------------------------------------------------------
if __name__ == "__main__":
    # small shapes consistent with the module:
    B, N, D = 2, 32, 4
    npoint = 8
    radius_list = (0.4, 0.8)
    nsample_list = (8, 16)
    mlp_list = [[16, 32], [16, 32]]

    key = jax.random.PRNGKey(0)
    k_xyz, k_pts, k_par = jax.random.split(key, 3)
    xyz = jax.random.normal(k_xyz, (B, 3, N), jnp.float32)             # [B,3,N]
    points = jax.random.normal(k_pts, (B, D, N), jnp.float32)          # [B,D,N]

    params = init_msg_params(k_par, D, mlp_list)

    # one jit region over both radius scales so XLA overlaps the scale-1
    # grouping glue with the scale-0 Pallas kernel.
    fwd = jax.jit(functools.partial(
        pointnet_sa_msg_forward,
        npoint=npoint, radius_list=radius_list, nsample_list=nsample_list))

    new_xyz, new_points = fwd(xyz, points, params)
    jax.block_until_ready((new_xyz, new_points))

    assert new_xyz.shape == (B, 3, npoint)
    assert new_points.shape == (B, sum(m[-1] for m in mlp_list), npoint)
    assert bool(jnp.all(jnp.isfinite(new_points)))
    print("KERNEL_OK")
</pallas_src>

<mosaic_0001>
module attributes {stable_mosaic.version = 11 : i64} {
  func.func @_mlp_maxpool_kernel(%arg0: i32, %arg1: i32, %arg2: memref<8x32x8xbf16, #tpu.memory_space<vmem>>, %arg3: memref<8x24xbf16, #tpu.memory_space<vmem>>, %arg4: memref<24x128xbf16, #tpu.memory_space<vmem>>, %arg5: memref<32x128xbf16, #tpu.memory_space<vmem>>, %arg6: memref<32x128xf32, #tpu.memory_space<vmem>>) attributes {dimension_semantics = [#tpu.dimension_semantics<parallel>, #tpu.dimension_semantics<arbitrary>], iteration_bounds = array<i64: 1, 1>, scalar_prefetch = 0 : i64, scratch_operands = 1 : i64, tpu.core_type = #tpu.core_type<tc>, window_params = [{transform_indices = @transform_0, window_bounds = array<i64: 8, 32, 8>}, {pipeline_mode = #tpu.pipeline_mode<synchronous>, transform_indices = @transform_1, window_bounds = array<i64: 8, 24>}, {pipeline_mode = #tpu.pipeline_mode<synchronous>, transform_indices = @transform_2, window_bounds = array<i64: 24, 128>}, {transform_indices = @transform_3, window_bounds = array<i64: 32, 128>}]} {
    %c0 = arith.constant 0 : index
    %c0_0 = arith.constant 0 : index
    %c0_1 = arith.constant 0 : index
    %0 = vector.load %arg2[%c0, %c0_0, %c0_1] : memref<8x32x8xbf16, #tpu.memory_space<vmem>>, vector<8x32x8xbf16>
    %1 = vector.shape_cast %0 : vector<8x32x8xbf16> to vector<256x8xbf16>
    %c0_2 = arith.constant 0 : index
    %c0_3 = arith.constant 0 : index
    %2 = vector.load %arg3[%c0_2, %c0_3] : memref<8x24xbf16, #tpu.memory_space<vmem>>, vector<8x24xbf16>
    %cst = arith.constant dense<0.000000e+00> : vector<256x24xf32>
    %3 = tpu.matmul %1, %2, %cst {dimension_numbers = #tpu.dot_dimension_numbers<[1], [0], [0], [1], [0, 0, 1, 1], [], []>} : vector<256x8xbf16>, vector<8x24xbf16>, vector<256x24xf32> -> vector<256x24xf32>
    %cst_4 = arith.constant 0.000000e+00 : f32
    %4 = vector.broadcast %cst_4 : f32 to vector<256x24xf32>
    %5 = arith.maximumf %3, %4 : vector<256x24xf32>
    %6 = arith.truncf %5 : vector<256x24xf32> to vector<256x24xbf16>
    %c0_5 = arith.constant 0 : index
    %c0_6 = arith.constant 0 : index
    %7 = vector.load %arg4[%c0_5, %c0_6] : memref<24x128xbf16, #tpu.memory_space<vmem>>, vector<24x128xbf16>
    %cst_7 = arith.constant dense<0.000000e+00> : vector<256x128xf32>
    %8 = tpu.matmul %6, %7, %cst_7 {dimension_numbers = #tpu.dot_dimension_numbers<[1], [0], [0], [1], [0, 0, 1, 1], [], []>} : vector<256x24xbf16>, vector<24x128xbf16>, vector<256x128xf32> -> vector<256x128xf32>
    %cst_8 = arith.constant 0.000000e+00 : f32
    %9 = vector.broadcast %cst_8 : f32 to vector<256x128xf32>
    %10 = arith.maximumf %8, %9 : vector<256x128xf32>
    %11 = vector.extract_strided_slice %10 {offsets = [0, 0], sizes = [32, 128], strides = [1, 1]} : vector<256x128xf32> to vector<32x128xf32>
    %12 = vector.extract_strided_slice %10 {offsets = [32, 0], sizes = [32, 128], strides = [1, 1]} : vector<256x128xf32> to vector<32x128xf32>
    %13 = arith.maximumf %11, %12 : vector<32x128xf32>
    %14 = vector.extract_strided_slice %10 {offsets = [64, 0], sizes = [32, 128], strides = [1, 1]} : vector<256x128xf32> to vector<32x128xf32>
    %15 = arith.maximumf %13, %14 : vector<32x128xf32>
    %16 = vector.extract_strided_slice %10 {offsets = [96, 0], sizes = [32, 128], strides = [1, 1]} : vector<256x128xf32> to vector<32x128xf32>
    %17 = arith.maximumf %15, %16 : vector<32x128xf32>
    %18 = vector.extract_strided_slice %10 {offsets = [128, 0], sizes = [32, 128], strides = [1, 1]} : vector<256x128xf32> to vector<32x128xf32>
    %19 = arith.maximumf %17, %18 : vector<32x128xf32>
    %20 = vector.extract_strided_slice %10 {offsets = [160, 0], sizes = [32, 128], strides = [1, 1]} : vector<256x128xf32> to vector<32x128xf32>
    %21 = arith.maximumf %19, %20 : vector<32x128xf32>
    %22 = vector.extract_strided_slice %10 {offsets = [192, 0], sizes = [32, 128], strides = [1, 1]} : vector<256x128xf32> to vector<32x128xf32>
    %23 = arith.maximumf %21, %22 : vector<32x128xf32>
    %24 = vector.extract_strided_slice %10 {offsets = [224, 0], sizes = [32, 128], strides = [1, 1]} : vector<256x128xf32> to vector<32x128xf32>
    %25 = arith.maximumf %23, %24 : vector<32x128xf32>
    %c0_i32 = arith.constant 0 : i32
    %26 = arith.cmpi eq, %arg1, %c0_i32 : i32
    %27 = arith.extui %26 : i1 to i32
    %c0_i32_9 = arith.constant 0 : i32
    %28 = arith.cmpi ne, %27, %c0_i32_9 : i32
    scf.if %28 {
      %c0_14 = arith.constant 0 : index
      %c0_15 = arith.constant 0 : index
      %35 = vector.load %arg6[%c0_14, %c0_15] : memref<32x128xf32, #tpu.memory_space<vmem>>, vector<32x128xf32>
      tpu.vector_store %arg6[%c0_14, %c0_15], %25 {strides = array<i32>} : memref<32x128xf32, #tpu.memory_space<vmem>>, vector<32x128xf32>,
    } else {
    }
    %c0_i32_10 = arith.constant 0 : i32
    %29 = arith.cmpi ne, %arg1, %c0_i32_10 : i32
    %30 = arith.extui %29 : i1 to i32
    %c0_i32_11 = arith.constant 0 : i32
    %31 = arith.cmpi ne, %30, %c0_i32_11 : i32
    scf.if %31 {
      %c0_14 = arith.constant 0 : index
      %c0_15 = arith.constant 0 : index
      %35 = vector.load %arg6[%c0_14, %c0_15] : memref<32x128xf32, #tpu.memory_space<vmem>>, vector<32x128xf32>
      %36 = arith.maximumf %35, %25 : vector<32x128xf32>
      %c0_16 = arith.constant 0 : index
      %c0_17 = arith.constant 0 : index
      %37 = vector.load %arg6[%c0_16, %c0_17] : memref<32x128xf32, #tpu.memory_space<vmem>>, vector<32x128xf32>
      tpu.vector_store %arg6[%c0_16, %c0_17], %36 {strides = array<i32>} : memref<32x128xf32, #tpu.memory_space<vmem>>, vector<32x128xf32>,
    } else {
    }
    %c0_i32_12 = arith.constant 0 : i32
    %32 = arith.cmpi eq, %arg1, %c0_i32_12 : i32
    %33 = arith.extui %32 : i1 to i32
    %c0_i32_13 = arith.constant 0 : i32
    %34 = arith.cmpi ne, %33, %c0_i32_13 : i32
    scf.if %34 {
      %c0_14 = arith.constant 0 : index
      %c0_15 = arith.constant 0 : index
      %35 = vector.load %arg6[%c0_14, %c0_15] : memref<32x128xf32, #tpu.memory_space<vmem>>, vector<32x128xf32>
      %36 = arith.truncf %35 : vector<32x128xf32> to vector<32x128xbf16>
      %c0_16 = arith.constant 0 : index
      %c0_17 = arith.constant 0 : index
      %37 = vector.load %arg5[%c0_16, %c0_17] : memref<32x128xbf16, #tpu.memory_space<vmem>>, vector<32x128xbf16>
      tpu.vector_store %arg5[%c0_16, %c0_17], %36 {strides = array<i32>} : memref<32x128xbf16, #tpu.memory_space<vmem>>, vector<32x128xbf16>,
    } else {
    }
    return
  }
  func.func @transform_0(%arg0: i32, %arg1: i32) -> (i32, i32, i32) {
    %c0_i32 = arith.constant 0 : i32
    %c0_i32_0 = arith.constant 0 : i32
    return %arg1, %arg0, %c0_i32 : i32, i32, i32
  }
  func.func @transform_1(%arg0: i32, %arg1: i32) -> (i32, i32) {
    %c0_i32 = arith.constant 0 : i32
    %c0_i32_0 = arith.constant 0 : i32
    %c0_i32_1 = arith.constant 0 : i32
    return %c0_i32, %c0_i32_0 : i32, i32
  }
  func.func @transform_2(%arg0: i32, %arg1: i32) -> (i32, i32) {
    %c0_i32 = arith.constant 0 : i32
    %c0_i32_0 = arith.constant 0 : i32
    %c0_i32_1 = arith.constant 0 : i32
    return %c0_i32, %c0_i32_0 : i32, i32
  }
  func.func @transform_3(%arg0: i32, %arg1: i32) -> (i32, i32) {
    %c0_i32 = arith.constant 0 : i32
    %c0_i32_0 = arith.constant 0 : i32
    return %arg0, %c0_i32 : i32, i32
  }
}

module attributes {stable_mosaic.version = 11 : i64} {
  func.func @_mlp_maxpool_kernel(%arg0: i32, %arg1: i32, %arg2: memref<8x32x8xbf16, #tpu.memory_space<vmem>>, %arg3: memref<8x24xbf16, #tpu.memory_space<vmem>>, %arg4: memref<24x128xbf16, #tpu.memory_space<vmem>>, %arg5: memref<32x128xbf16, #tpu.memory_space<vmem>>, %arg6: memref<32x128xf32, #tpu.memory_space<vmem>>) attributes {dimension_semantics = [#tpu.dimension_semantics<parallel>, #tpu.dimension_semantics<arbitrary>], iteration_bounds = array<i64: 1, 2>, scalar_prefetch = 0 : i64, scratch_operands = 1 : i64, tpu.core_type = #tpu.core_type<tc>, window_params = [{transform_indices = @transform_0, window_bounds = array<i64: 8, 32, 8>}, {pipeline_mode = #tpu.pipeline_mode<synchronous>, transform_indices = @transform_1, window_bounds = array<i64: 8, 24>}, {pipeline_mode = #tpu.pipeline_mode<synchronous>, transform_indices = @transform_2, window_bounds = array<i64: 24, 128>}, {transform_indices = @transform_3, window_bounds = array<i64: 32, 128>}]} {
    %c0 = arith.constant 0 : index
    %c0_0 = arith.constant 0 : index
    %c0_1 = arith.constant 0 : index
    %0 = vector.load %arg2[%c0, %c0_0, %c0_1] : memref<8x32x8xbf16, #tpu.memory_space<vmem>>, vector<8x32x8xbf16>
    %1 = vector.shape_cast %0 : vector<8x32x8xbf16> to vector<256x8xbf16>
    %c0_2 = arith.constant 0 : index
    %c0_3 = arith.constant 0 : index
    %2 = vector.load %arg3[%c0_2, %c0_3] : memref<8x24xbf16, #tpu.memory_space<vmem>>, vector<8x24xbf16>
    %cst = arith.constant dense<0.000000e+00> : vector<256x24xf32>
    %3 = tpu.matmul %1, %2, %cst {dimension_numbers = #tpu.dot_dimension_numbers<[1], [0], [0], [1], [0, 0, 1, 1], [], []>} : vector<256x8xbf16>, vector<8x24xbf16>, vector<256x24xf32> -> vector<256x24xf32>
    %cst_4 = arith.constant 0.000000e+00 : f32
    %4 = vector.broadcast %cst_4 : f32 to vector<256x24xf32>
    %5 = arith.maximumf %3, %4 : vector<256x24xf32>
    %6 = arith.truncf %5 : vector<256x24xf32> to vector<256x24xbf16>
    %c0_5 = arith.constant 0 : index
    %c0_6 = arith.constant 0 : index
    %7 = vector.load %arg4[%c0_5, %c0_6] : memref<24x128xbf16, #tpu.memory_space<vmem>>, vector<24x128xbf16>
    %cst_7 = arith.constant dense<0.000000e+00> : vector<256x128xf32>
    %8 = tpu.matmul %6, %7, %cst_7 {dimension_numbers = #tpu.dot_dimension_numbers<[1], [0], [0], [1], [0, 0, 1, 1], [], []>} : vector<256x24xbf16>, vector<24x128xbf16>, vector<256x128xf32> -> vector<256x128xf32>
    %cst_8 = arith.constant 0.000000e+00 : f32
    %9 = vector.broadcast %cst_8 : f32 to vector<256x128xf32>
    %10 = arith.maximumf %8, %9 : vector<256x128xf32>
    %11 = vector.extract_strided_slice %10 {offsets = [0, 0], sizes = [32, 128], strides = [1, 1]} : vector<256x128xf32> to vector<32x128xf32>
    %12 = vector.extract_strided_slice %10 {offsets = [32, 0], sizes = [32, 128], strides = [1, 1]} : vector<256x128xf32> to vector<32x128xf32>
    %13 = arith.maximumf %11, %12 : vector<32x128xf32>
    %14 = vector.extract_strided_slice %10 {offsets = [64, 0], sizes = [32, 128], strides = [1, 1]} : vector<256x128xf32> to vector<32x128xf32>
    %15 = arith.maximumf %13, %14 : vector<32x128xf32>
    %16 = vector.extract_strided_slice %10 {offsets = [96, 0], sizes = [32, 128], strides = [1, 1]} : vector<256x128xf32> to vector<32x128xf32>
    %17 = arith.maximumf %15, %16 : vector<32x128xf32>
    %18 = vector.extract_strided_slice %10 {offsets = [128, 0], sizes = [32, 128], strides = [1, 1]} : vector<256x128xf32> to vector<32x128xf32>
    %19 = arith.maximumf %17, %18 : vector<32x128xf32>
    %20 = vector.extract_strided_slice %10 {offsets = [160, 0], sizes = [32, 128], strides = [1, 1]} : vector<256x128xf32> to vector<32x128xf32>
    %21 = arith.maximumf %19, %20 : vector<32x128xf32>
    %22 = vector.extract_strided_slice %10 {offsets = [192, 0], sizes = [32, 128], strides = [1, 1]} : vector<256x128xf32> to vector<32x128xf32>
    %23 = arith.maximumf %21, %22 : vector<32x128xf32>
    %24 = vector.extract_strided_slice %10 {offsets = [224, 0], sizes = [32, 128], strides = [1, 1]} : vector<256x128xf32> to vector<32x128xf32>
    %25 = arith.maximumf %23, %24 : vector<32x128xf32>
    %c0_i32 = arith.constant 0 : i32
    %26 = arith.cmpi eq, %arg1, %c0_i32 : i32
    %27 = arith.extui %26 : i1 to i32
    %c0_i32_9 = arith.constant 0 : i32
    %28 = arith.cmpi ne, %27, %c0_i32_9 : i32
    scf.if %28 {
      %c0_13 = arith.constant 0 : index
      %c0_14 = arith.constant 0 : index
      %35 = vector.load %arg6[%c0_13, %c0_14] : memref<32x128xf32, #tpu.memory_space<vmem>>, vector<32x128xf32>
      tpu.vector_store %arg6[%c0_13, %c0_14], %25 {strides = array<i32>} : memref<32x128xf32, #tpu.memory_space<vmem>>, vector<32x128xf32>,
    } else {
    }
    %c0_i32_10 = arith.constant 0 : i32
    %29 = arith.cmpi ne, %arg1, %c0_i32_10 : i32
    %30 = arith.extui %29 : i1 to i32
    %c0_i32_11 = arith.constant 0 : i32
    %31 = arith.cmpi ne, %30, %c0_i32_11 : i32
    scf.if %31 {
      %c0_13 = arith.constant 0 : index
      %c0_14 = arith.constant 0 : index
      %35 = vector.load %arg6[%c0_13, %c0_14] : memref<32x128xf32, #tpu.memory_space<vmem>>, vector<32x128xf32>
      %36 = arith.maximumf %35, %25 : vector<32x128xf32>
      %c0_15 = arith.constant 0 : index
      %c0_16 = arith.constant 0 : index
      %37 = vector.load %arg6[%c0_15, %c0_16] : memref<32x128xf32, #tpu.memory_space<vmem>>, vector<32x128xf32>
      tpu.vector_store %arg6[%c0_15, %c0_16], %36 {strides = array<i32>} : memref<32x128xf32, #tpu.memory_space<vmem>>, vector<32x128xf32>,
    } else {
    }
    %c1_i32 = arith.constant 1 : i32
    %32 = arith.cmpi eq, %arg1, %c1_i32 : i32
    %33 = arith.extui %32 : i1 to i32
    %c0_i32_12 = arith.constant 0 : i32
    %34 = arith.cmpi ne, %33, %c0_i32_12 : i32
    scf.if %34 {
      %c0_13 = arith.constant 0 : index
      %c0_14 = arith.constant 0 : index
      %35 = vector.load %arg6[%c0_13, %c0_14] : memref<32x128xf32, #tpu.memory_space<vmem>>, vector<32x128xf32>
      %36 = arith.truncf %35 : vector<32x128xf32> to vector<32x128xbf16>
      %c0_15 = arith.constant 0 : index
      %c0_16 = arith.constant 0 : index
      %37 = vector.load %arg5[%c0_15, %c0_16] : memref<32x128xbf16, #tpu.memory_space<vmem>>, vector<32x128xbf16>
      tpu.vector_store %arg5[%c0_15, %c0_16], %36 {strides = array<i32>} : memref<32x128xbf16, #tpu.memory_space<vmem>>, vector<32x128xbf16>,
    } else {
    }
    return
  }
  func.func @transform_0(%arg0: i32, %arg1: i32) -> (i32, i32, i32) {
    %c0_i32 = arith.constant 0 : i32
    %c0_i32_0 = arith.constant 0 : i32
    return %arg1, %arg0, %c0_i32 : i32, i32, i32
  }
  func.func @transform_1(%arg0: i32, %arg1: i32) -> (i32, i32) {
    %c0_i32 = arith.constant 0 : i32
    %c0_i32_0 = arith.constant 0 : i32
    %c0_i32_1 = arith.constant 0 : i32
    return %c0_i32, %c0_i32_0 : i32, i32
  }
  func.func @transform_2(%arg0: i32, %arg1: i32) -> (i32, i32) {
    %c0_i32 = arith.constant 0 : i32
    %c0_i32_0 = arith.constant 0 : i32
    %c0_i32_1 = arith.constant 0 : i32
    return %c0_i32, %c0_i32_0 : i32, i32
  }
  func.func @transform_3(%arg0: i32, %arg1: i32) -> (i32, i32) {
    %c0_i32 = arith.constant 0 : i32
    %c0_i32_0 = arith.constant 0 : i32
    return %arg0, %c0_i32 : i32, i32
  }
}

</mosaic_0001>

<bundles_post_ra>
// kernel: custom-call.12
= control target key start
LH: loop header
LB: loop body
LE: loop exit
PB: predicated region body
PF: predicated region fallthrough
CT: control target
= control target key end

     0   :  { %s6_s0 = inlined_call_operand.vmem [shape: f32[2,32], index: 0, kind: output, shape index: {}]  }

// kernel: pointnet_sa_msg_forward.2
= control target key start
LH: loop header
LB: loop body
LE: loop exit
PB: predicated region body
PF: predicated region fallthrough
CT: control target
= control target key end

     0   :  { %vm177_vm0 = vcmask 1043456   ;;  %vm128_vm1 = vcmask 64512   ;;  %vm402_vm2 = vcmask 195584   ;;  %s1043_s1 = inlined_call_operand.vmem [shape: bf16[8,24], index: 1, kind: input, shape index: {}]   ;;  %s1044_s0 = inlined_call_operand.vmem [shape: bf16[8,32,8], index: 0, kind: input, shape index: {}]   ;;  %s1045_s2 = inlined_call_operand.vmem [shape: bf16[24,128], index: 2, kind: input, shape index: {}]   ;;  %s1046_s3 = inlined_call_operand.vmem [shape: bf16[32,128], index: 3, kind: output, shape index: {}]  }
   0x1   :  { %v47_v0 = vld [vmem:[%s1043_s1] sm:$0xf]  ;;  %v907_v3 = vld [vmem:[%s1044_s0 + $0x8] sm:$0xff]   ;;  %v908_v4 = vld [vmem:[%s1044_s0 + $0x10] sm:$0xff]  }
   0x2   :  { %904 = vmatprep.subr.msk.bf16.mxu0 %vm177_vm0, %v47_v0  ;;  %v179_v1 = vsel %vm177_vm0, %v47_v0, 0  ;;  %v906_v2 = vld [vmem:[%s1044_s0] sm:$0xff]   ;;  %v909_v5 = vld [vmem:[%s1044_s0 + $0x18] sm:$0xff]   ;;  %v911_v7 = vld [vmem:[%s1044_s0 + $0x28] sm:$0xff]  }
   0x3   :  { %835 = vmatpush3.bf16.msra.mxu0 %v179_v1  ;;  %836 = vmatprep.mubr.msk.bf16.mxu0 %vm128_vm1, %v906_v2  ;;  %v910_v6 = vld [vmem:[%s1044_s0 + $0x20] sm:$0xff]   ;;  %v912_v8 = vld [vmem:[%s1044_s0 + $0x30] sm:$0xff]   ;;  %v913_v9 = vld [vmem:[%s1044_s0 + $0x38] sm:$0xff]  }
   0x4   :  { %v914_v10 = vld [vmem:[%s1044_s0 + $0x40] sm:$0xff]   ;;  %v915_v11 = vld [vmem:[%s1044_s0 + $0x48] sm:$0xff]   ;;  %v916_v12 = vld [vmem:[%s1044_s0 + $0x50] sm:$0xff]  }
   0x5   :  { %v917_v13 = vld [vmem:[%s1044_s0 + $0x58] sm:$0xff]   ;;  %v918_v14 = vld [vmem:[%s1044_s0 + $0x60] sm:$0xff]   ;;  %v919_v15 = vld [vmem:[%s1044_s0 + $0x68] sm:$0xff]  }
   0x6   :  { %837 = vmatmul.mubr.msk.bf16.vlgmr.msra.gmra.mrb[0].mxu0 %vm128_vm1, %v907_v3  ;;  %v920_v16 = vld [vmem:[%s1044_s0 + $0x70] sm:$0xff]   ;;  %v921_v17 = vld [vmem:[%s1044_s0 + $0x78] sm:$0xff]   ;;  %v922_v18 = vld [vmem:[%s1045_s2] sm:$0xff]  }
   0x7   :  { %840 = vmatprep.mubr.msk.bf16.mxu0 %vm128_vm1, %v908_v4  ;;  %v923_v19 = vld [vmem:[%s1045_s2 + $0x8] ss:$0 sps:$4 sm:$0xff]   ;;  %868 = vmatprep.subr.bf16.mxu1 %v922_v18 }
   0x8   :  { %869 = vmatpush3.bf16.msra.mxu1 %v922_v18  ;;  %v452_v20 = vsel %vm177_vm0, %v923_v19, 0 }
   0x9   :  { %905 = vmatprep.subr.msk.bf16.mxu1 %vm177_vm0, %v923_v19 }
   0xc   :  { %871 = vmatpush3.bf16.msra.mxu1 %v452_v20 }
   0xe   :  { %841 = vmatmul.mubr.msk.bf16.gmra.mrb[4].mxu0 %vm128_vm1, %v909_v5 }
   0xf   :  { %844 = vmatprep.mubr.msk.bf16.mxu0 %vm128_vm1, %v910_v6 }
  0x16   :  { %845 = vmatmul.mubr.msk.bf16.gmra.mrb[8].mxu0 %vm128_vm1, %v911_v7 }
  0x17   :  { %848 = vmatprep.mubr.msk.bf16.mxu0 %vm128_vm1, %v912_v8 }
  0x1e   :  { %849 = vmatmul.mubr.msk.bf16.gmra.mrb[12].mxu0 %vm128_vm1, %v913_v9 }
  0x1f   :  { %852 = vmatprep.mubr.msk.bf16.mxu0 %vm128_vm1, %v914_v10 }
  0x26   :  { %853 = vmatmul.mubr.msk.bf16.gmra.mrb[16].mxu0 %vm128_vm1, %v915_v11 }
  0x27   :  { %856 = vmatprep.mubr.msk.bf16.mxu0 %vm128_vm1, %v916_v12 }
  0x2e   :  { %857 = vmatmul.mubr.msk.bf16.gmra.mrb[20].mxu0 %vm128_vm1, %v917_v13 }
  0x2f   :  { %860 = vmatprep.mubr.msk.bf16.mxu0 %vm128_vm1, %v918_v14 }
  0x36   :  { %861 = vmatmul.mubr.msk.bf16.gmra.mrb[24].mxu0 %vm128_vm1, %v919_v15 }
  0x37   :  { %864 = vmatprep.mubr.msk.bf16.mxu0 %vm128_vm1, %v920_v16 }
  0x3e   :  { %865 = vmatmul.mubr.msk.bf16.gmra.mrb[28].mxu0 %vm128_vm1, %v921_v17 }
  0xd9   :  { %v838_v21 = vpop.f32.mrb[0].mxu0 }
  0xda   :  { %v215_v22 = vpop.f32.mrb[1].mxu0  ;;  %v344_v24 = vmax.f32 %v838_v21, 0.0 }
  0xdb   :  { %v839_v23 = vpop.f32.mrb[2].mxu0  ;;  %v342_v27 = vmax.f32 %v215_v22, 0.0 }
  0xdc   :  { %v345_v25 = vmax.f32 %v839_v23, 0.0  ;;  %v218_v26 = vpop.f32.mrb[3].mxu0 }
  0xdd   :  { %v343_v28 = vmax.f32 %v218_v26, 0.0 }
  0xde   :  { %v375_v29 = vpack.c.bf16 %v345_v25, %v344_v24 }
  0xdf   :  { %v374_v30 = vpack.c.bf16 %v343_v28, %v342_v27 }
  0xe1   :  { %v842_v31 = vpop.f32.mrb[4].mxu0  ;;  %872 = vmatprep.mubr.msk.bf16.mxu1 %vm402_vm2, %v374_v30 }
  0xe2   :  { %v231_v32 = vpop.f32.mrb[5].mxu0  ;;  %873 = vmatmul.mubr.msk.bf16.vlgmr.msra.gmra.mrb[0].mxu1 %vm402_vm2, %v375_v29  ;;  %v348_v34 = vmax.f32 %v842_v31, 0.0 }
  0xe3   :  { %v843_v33 = vpop.f32.mrb[6].mxu0  ;;  %v346_v37 = vmax.f32 %v231_v32, 0.0 }
  0xe4   :  { %v349_v35 = vmax.f32 %v843_v33, 0.0  ;;  %v234_v36 = vpop.f32.mrb[7].mxu0 }
  0xe5   :  { %v347_v38 = vmax.f32 %v234_v36, 0.0 }
  0xe6   :  { %v377_v39 = vpack.c.bf16 %v349_v35, %v348_v34 }
  0xe7   :  { %v376_v40 = vpack.c.bf16 %v347_v38, %v346_v37 }
  0xe9   :  { %v846_v41 = vpop.f32.mrb[8].mxu0  ;;  %876 = vmatprep.mubr.msk.bf16.mxu1 %vm402_vm2, %v376_v40 }
  0xea   :  { %v247_v42 = vpop.f32.mrb[9].mxu0  ;;  %877 = vmatmul.mubr.msk.bf16.gmra.mrb[4].mxu1 %vm402_vm2, %v377_v39  ;;  %v352_v44 = vmax.f32 %v846_v41, 0.0 }
  0xeb   :  { %v847_v43 = vpop.f32.mrb[10].mxu0  ;;  %v350_v47 = vmax.f32 %v247_v42, 0.0 }
  0xec   :  { %v353_v45 = vmax.f32 %v847_v43, 0.0  ;;  %v250_v46 = vpop.f32.mrb[11].mxu0 }
  0xed   :  { %v351_v48 = vmax.f32 %v250_v46, 0.0 }
  0xee   :  { %v379_v49 = vpack.c.bf16 %v353_v45, %v352_v44 }
  0xef   :  { %v378_v50 = vpack.c.bf16 %v351_v48, %v350_v47 }
  0xf1   :  { %v850_v51 = vpop.f32.mrb[12].mxu0  ;;  %880 = vmatprep.mubr.msk.bf16.mxu1 %vm402_vm2, %v378_v50 }
  0xf2   :  { %v263_v52 = vpop.f32.mrb[13].mxu0  ;;  %881 = vmatmul.mubr.msk.bf16.gmra.mrb[8].mxu1 %vm402_vm2, %v379_v49  ;;  %v356_v54 = vmax.f32 %v850_v51, 0.0 }
  0xf3   :  { %v851_v53 = vpop.f32.mrb[14].mxu0  ;;  %v354_v57 = vmax.f32 %v263_v52, 0.0 }
  0xf4   :  { %v357_v55 = vmax.f32 %v851_v53, 0.0  ;;  %v266_v56 = vpop.f32.mrb[15].mxu0 }
  0xf5   :  { %v355_v58 = vmax.f32 %v266_v56, 0.0 }
  0xf6   :  { %v381_v59 = vpack.c.bf16 %v357_v55, %v356_v54 }
  0xf7   :  { %v380_v60 = vpack.c.bf16 %v355_v58, %v354_v57 }
  0xf9   :  { %v854_v61 = vpop.f32.mrb[16].mxu0  ;;  %884 = vmatprep.mubr.msk.bf16.mxu1 %vm402_vm2, %v380_v60 }
  0xfa   :  { %v279_v62 = vpop.f32.mrb[17].mxu0  ;;  %885 = vmatmul.mubr.msk.bf16.gmra.mrb[12].mxu1 %vm402_vm2, %v381_v59  ;;  %v360_v0 = vmax.f32 %v854_v61, 0.0 }
  0xfb   :  { %v855_v63 = vpop.f32.mrb[18].mxu0  ;;  %v358_v3 = vmax.f32 %v279_v62, 0.0 }
  0xfc   :  { %v361_v1 = vmax.f32 %v855_v63, 0.0  ;;  %v282_v2 = vpop.f32.mrb[19].mxu0 }
  0xfd   :  { %v359_v4 = vmax.f32 %v282_v2, 0.0 }
  0xfe   :  { %v383_v5 = vpack.c.bf16 %v361_v1, %v360_v0 }
  0xff   :  { %v382_v6 = vpack.c.bf16 %v359_v4, %v358_v3 }
 0x101   :  { %v858_v7 = vpop.f32.mrb[20].mxu0  ;;  %888 = vmatprep.mubr.msk.bf16.mxu1 %vm402_vm2, %v382_v6 }
 0x102   :  { %v295_v8 = vpop.f32.mrb[21].mxu0  ;;  %889 = vmatmul.mubr.msk.bf16.gmra.mrb[16].mxu1 %vm402_vm2, %v383_v5  ;;  %v364_v10 = vmax.f32 %v858_v7, 0.0 }
 0x103   :  { %v859_v9 = vpop.f32.mrb[22].mxu0  ;;  %v362_v13 = vmax.f32 %v295_v8, 0.0 }
 0x104   :  { %v365_v11 = vmax.f32 %v859_v9, 0.0  ;;  %v298_v12 = vpop.f32.mrb[23].mxu0 }
 0x105   :  { %v363_v14 = vmax.f32 %v298_v12, 0.0 }
 0x106   :  { %v385_v15 = vpack.c.bf16 %v365_v11, %v364_v10 }
 0x107   :  { %v384_v16 = vpack.c.bf16 %v363_v14, %v362_v13 }
 0x109   :  { %v862_v17 = vpop.f32.mrb[24].mxu0  ;;  %892 = vmatprep.mubr.msk.bf16.mxu1 %vm402_vm2, %v384_v16 }
 0x10a   :  { %v311_v18 = vpop.f32.mrb[25].mxu0  ;;  %893 = vmatmul.mubr.msk.bf16.gmra.mrb[20].mxu1 %vm402_vm2, %v385_v15  ;;  %v368_v20 = vmax.f32 %v862_v17, 0.0 }
 0x10b   :  { %v863_v19 = vpop.f32.mrb[26].mxu0  ;;  %v366_v23 = vmax.f32 %v311_v18, 0.0 }
 0x10c   :  { %v369_v21 = vmax.f32 %v863_v19, 0.0  ;;  %v314_v22 = vpop.f32.mrb[27].mxu0 }
 0x10d   :  { %v367_v24 = vmax.f32 %v314_v22, 0.0 }
 0x10e   :  { %v387_v25 = vpack.c.bf16 %v369_v21, %v368_v20 }
 0x10f   :  { %v386_v26 = vpack.c.bf16 %v367_v24, %v366_v23 }
 0x111   :  { %v866_v27 = vpop.f32.mrb[28].mxu0  ;;  %896 = vmatprep.mubr.msk.bf16.mxu1 %vm402_vm2, %v386_v26 }
 0x112   :  { %v327_v28 = vpop.f32.mrb[29].mxu0  ;;  %897 = vmatmul.mubr.msk.bf16.gmra.mrb[24].mxu1 %vm402_vm2, %v387_v25  ;;  %v372_v30 = vmax.f32 %v866_v27, 0.0 }
 0x113   :  { %v867_v29 = vpop.f32.mrb[30].mxu0  ;;  %v370_v33 = vmax.f32 %v327_v28, 0.0 }
 0x114   :  { %v373_v31 = vmax.f32 %v867_v29, 0.0  ;;  %v330_v32 = vpop.f32.mrb[31].mxu0 }
 0x115   :  { %v371_v34 = vmax.f32 %v330_v32, 0.0 }
 0x116   :  { %v389_v35 = vpack.c.bf16 %v373_v31, %v372_v30 }
 0x117   :  { %v388_v36 = vpack.c.bf16 %v371_v34, %v370_v33 }
 0x119   :  { %900 = vmatprep.mubr.msk.bf16.mxu1 %vm402_vm2, %v388_v36 }
 0x11a   :  { %901 = vmatmul.mubr.msk.bf16.gmra.mrb[28].mxu1 %vm402_vm2, %v389_v35 }
 0x1b5   :  { %v874_v37 = vpop.f32.mrb[0].mxu1 }
 0x1b6   :  { %v488_v38 = vpop.f32.mrb[1].mxu1  ;;  %v617_v42 = vmax.f32 %v874_v37, 0.0 }
 0x1b7   :  { %v875_v39 = vpop.f32.mrb[2].mxu1  ;;  %v615_v45 = vmax.f32 %v488_v38, 0.0 }
 0x1b8   :  { %v491_v40 = vpop.f32.mrb[3].mxu1  ;;  %v618_v48 = vmax.f32 %v875_v39, 0.0 }
 0x1b9   :  { %v616_v52 = vmax.f32 %v491_v40, 0.0 }
 0x1bd   :  { %v878_v41 = vpop.f32.mrb[4].mxu1 }
 0x1be   :  { %v621_v43 = vmax.f32 %v878_v41, 0.0  ;;  %v504_v44 = vpop.f32.mrb[5].mxu1 }
 0x1bf   :  { %v619_v46 = vmax.f32 %v504_v44, 0.0  ;;  %v879_v47 = vpop.f32.mrb[6].mxu1 }
 0x1c0   :  { %v649_v49 = vmax.f32 %v617_v42, %v621_v43  ;;  %v622_v50 = vmax.f32 %v879_v47, 0.0  ;;  %v507_v51 = vpop.f32.mrb[7].mxu1 }
 0x1c1   :  { %v647_v53 = vmax.f32 %v615_v45, %v619_v46  ;;  %v620_v54 = vmax.f32 %v507_v51, 0.0 }
 0x1c2   :  { %v650_v55 = vmax.f32 %v618_v48, %v622_v50 }
 0x1c3   :  { %v648_v56 = vmax.f32 %v616_v52, %v620_v54 }
 0x1c5   :  { %v882_v57 = vpop.f32.mrb[8].mxu1 }
 0x1c6   :  { %v625_v58 = vmax.f32 %v882_v57, 0.0  ;;  %v520_v59 = vpop.f32.mrb[9].mxu1 }
 0x1c7   :  { %v623_v60 = vmax.f32 %v520_v59, 0.0  ;;  %v883_v61 = vpop.f32.mrb[10].mxu1 }
 0x1c8   :  { %v653_v62 = vmax.f32 %v649_v49, %v625_v58  ;;  %v626_v63 = vmax.f32 %v883_v61, 0.0  ;;  %v523_v0 = vpop.f32.mrb[11].mxu1 }
 0x1c9   :  { %v651_v1 = vmax.f32 %v647_v53, %v623_v60  ;;  %v624_v2 = vmax.f32 %v523_v0, 0.0 }
 0x1ca   :  { %v654_v3 = vmax.f32 %v650_v55, %v626_v63 }
 0x1cb   :  { %v652_v4 = vmax.f32 %v648_v56, %v624_v2 }
 0x1cd   :  { %v886_v5 = vpop.f32.mrb[12].mxu1 }
 0x1ce   :  { %v629_v6 = vmax.f32 %v886_v5, 0.0  ;;  %v536_v7 = vpop.f32.mrb[13].mxu1 }
 0x1cf   :  { %v627_v8 = vmax.f32 %v536_v7, 0.0  ;;  %v887_v9 = vpop.f32.mrb[14].mxu1 }
 0x1d0   :  { %v657_v10 = vmax.f32 %v653_v62, %v629_v6  ;;  %v630_v11 = vmax.f32 %v887_v9, 0.0  ;;  %v539_v12 = vpop.f32.mrb[15].mxu1 }
 0x1d1   :  { %v655_v13 = vmax.f32 %v651_v1, %v627_v8  ;;  %v628_v14 = vmax.f32 %v539_v12, 0.0 }
 0x1d2   :  { %v658_v15 = vmax.f32 %v654_v3, %v630_v11 }
 0x1d3   :  { %v656_v16 = vmax.f32 %v652_v4, %v628_v14 }
 0x1d5   :  { %v890_v17 = vpop.f32.mrb[16].mxu1 }
 0x1d6   :  { %v633_v18 = vmax.f32 %v890_v17, 0.0  ;;  %v552_v19 = vpop.f32.mrb[17].mxu1 }
 0x1d7   :  { %v631_v20 = vmax.f32 %v552_v19, 0.0  ;;  %v891_v21 = vpop.f32.mrb[18].mxu1 }
 0x1d8   :  { %v661_v22 = vmax.f32 %v657_v10, %v633_v18  ;;  %v634_v23 = vmax.f32 %v891_v21, 0.0  ;;  %v555_v24 = vpop.f32.mrb[19].mxu1 }
 0x1d9   :  { %v659_v25 = vmax.f32 %v655_v13, %v631_v20  ;;  %v632_v26 = vmax.f32 %v555_v24, 0.0 }
 0x1da   :  { %v662_v27 = vmax.f32 %v658_v15, %v634_v23 }
 0x1db   :  { %v660_v28 = vmax.f32 %v656_v16, %v632_v26 }
 0x1dd   :  { %v894_v29 = vpop.f32.mrb[20].mxu1 }
 0x1de   :  { %v637_v30 = vmax.f32 %v894_v29, 0.0  ;;  %v568_v31 = vpop.f32.mrb[21].mxu1 }
 0x1df   :  { %v635_v32 = vmax.f32 %v568_v31, 0.0  ;;  %v895_v33 = vpop.f32.mrb[22].mxu1 }
 0x1e0   :  { %v665_v34 = vmax.f32 %v661_v22, %v637_v30  ;;  %v638_v35 = vmax.f32 %v895_v33, 0.0  ;;  %v571_v36 = vpop.f32.mrb[23].mxu1 }
 0x1e1   :  { %v663_v37 = vmax.f32 %v659_v25, %v635_v32  ;;  %v636_v38 = vmax.f32 %v571_v36, 0.0 }
 0x1e2   :  { %v666_v39 = vmax.f32 %v662_v27, %v638_v35 }
 0x1e3   :  { %v664_v40 = vmax.f32 %v660_v28, %v636_v38 }
 0x1e5   :  { %v898_v41 = vpop.f32.mrb[24].mxu1 }
 0x1e6   :  { %v641_v42 = vmax.f32 %v898_v41, 0.0  ;;  %v584_v43 = vpop.f32.mrb[25].mxu1 }
 0x1e7   :  { %v639_v44 = vmax.f32 %v584_v43, 0.0  ;;  %v899_v45 = vpop.f32.mrb[26].mxu1 }
 0x1e8   :  { %v669_v46 = vmax.f32 %v665_v34, %v641_v42  ;;  %v642_v47 = vmax.f32 %v899_v45, 0.0  ;;  %v587_v48 = vpop.f32.mrb[27].mxu1 }
 0x1e9   :  { %v667_v49 = vmax.f32 %v663_v37, %v639_v44  ;;  %v640_v50 = vmax.f32 %v587_v48, 0.0 }
 0x1ea   :  { %v670_v51 = vmax.f32 %v666_v39, %v642_v47 }
 0x1eb   :  { %v668_v52 = vmax.f32 %v664_v40, %v640_v50 }
 0x1ed   :  { %v902_v53 = vpop.f32.mrb[28].mxu1 }
 0x1ee   :  { %v645_v54 = vmax.f32 %v902_v53, 0.0  ;;  %v600_v55 = vpop.f32.mrb[29].mxu1 }
 0x1ef   :  { %v643_v56 = vmax.f32 %v600_v55, 0.0  ;;  %v903_v57 = vpop.f32.mrb[30].mxu1 }
 0x1f0   :  { %v673_v58 = vmax.f32 %v669_v46, %v645_v54  ;;  %v646_v59 = vmax.f32 %v903_v57, 0.0  ;;  %v603_v60 = vpop.f32.mrb[31].mxu1 }
 0x1f1   :  { %v671_v61 = vmax.f32 %v667_v49, %v643_v56  ;;  %v644_v62 = vmax.f32 %v603_v60, 0.0 }
 0x1f2   :  { %v674_v63 = vmax.f32 %v670_v51, %v646_v59 }
 0x1f3   :  { %v672_v0 = vmax.f32 %v668_v52, %v644_v62 }
 0x1f4   :  { %v796_v1 = vpack.c.bf16 %v674_v63, %v673_v58 }
 0x1f5   :  { %v791_v2 = vpack.c.bf16 %v672_v0, %v671_v61 }
 0x1f6   :  { %798 = vst [vmem:[%s1046_s3 + $0x8] sm:$0xff] %v796_v1  }
 0x1f7   :  { %792 = vst [vmem:[%s1046_s3] sm:$0xff] %v791_v2  }

// kernel: pointnet_sa_msg_forward.3
= control target key start
LH: loop header
LB: loop body
LE: loop exit
PB: predicated region body
PF: predicated region fallthrough
CT: control target
= control target key end

     0   :  { %s1263_s12 = smov 0   ;;  %s1265_s13 = smov 0   ;;  %s1368_s0 = inlined_call_operand.vmem [shape: bf16[16,32,8], index: 0, kind: input, shape index: {}]   ;;  %s1369_s1 = inlined_call_operand.vmem [shape: bf16[8,24], index: 1, kind: input, shape index: {}]   ;;  %s1370_s2 = inlined_call_operand.vmem [shape: bf16[24,128], index: 2, kind: input, shape index: {}]   ;;  %s1371_s3 = inlined_call_operand.vmem [shape: bf16[32,128], index: 3, kind: output, shape index: {}]  }
   0x1   :  { %s1267_s14 = smov 0  }
   0x2 LB: > { %s22_s15 = sadd.s32 1, %s1237_s13  ;;  %p989_p0 = scmp.ge.s32.totalorder %s1241_s14, 1  ;;  %s1241_s14 = sphi %s1267_s14, %s13_s14   ;;  %s1237_s13 = sphi %s1265_s13, %s1373_s13   ;;  %s1233_s12 = sphi %s1263_s12, %s1372_s12  }
   0x3   : > { %p23_p1 = scmp.ge.s32.totalorder %s22_s15, 2  ;;  %p158_p2 = scmp.lt.s32.totalorder %s1241_s14, 3 }
   0x5   : > { %s1375_s15 = smov (%p23_p1, %s22_s15), 0  ;;  %p159_p3 = pnand %p989_p0, %p158_p2 }
   0x6   : > { %v238_v0 = vld [vmem:[%s1369_s1] sm:$0xf] (!%p159_p3)  ;;  %vm368_vm0 = vcmask (!%p159_p3), 1043456   ;;  %s990_s18 = sshll.u32 (!%p159_p3), %s1233_s12, 3  ;;  %vm319_vm1 = vcmask (!%p159_p3), 64512   ;;  %vm593_vm2 = vcmask (!%p159_p3), 195584  }
   0x7   : > { %162 = sbr.rel (%p159_p3) target bundleno = 537 (0x219), region = 32  ;;  %1175 = vmatprep.subr.msk.bf16.mxu0 (!%p159_p3), %vm368_vm0, %v238_v0  ;;  %v370_v1 = vsel (!%p159_p3), %vm368_vm0, %v238_v0, 0  ;;  %p189_p4 = scmp.lt.s32.totalorder (!%p159_p3), %s990_s18, 15  ;;  %v1217_v18 = vld [vmem:[%s1370_s2] sm:$0xff] (!%p159_p3)   ;;  %v1218_v19 = vld [vmem:[%s1370_s2 + $0x8] ss:$0 sps:$4 sm:$0xff] (!%p159_p3)  }
   0x8   : > { %1106 = vmatpush3.bf16.msra.mxu0 (!%p159_p3), %v370_v1  ;;  %1139 = vmatprep.subr.bf16.mxu1 (!%p159_p3), %v1217_v18  ;;  %v643_v20 = vsel (!%p159_p3), %vm368_vm0, %v1218_v19, 0  ;;  %p1043_p5 = scmp.ne.s32.totalorder (!%p159_p3), %s1233_s12, 0 }
   0x9   : > { %1140 = vmatpush3.bf16.msra.mxu1 (!%p159_p3), %v1217_v18 }
   0xa   : > { %1176 = vmatprep.subr.msk.bf16.mxu1 (!%p159_p3), %vm368_vm0, %v1218_v19 }
   0xd   : > { %1142 = vmatpush3.bf16.msra.mxu1 (!%p159_p3), %v643_v20 }
   0xe   : > { %s1377_s18 = smov (!%p189_p4, %s990_s18), 15 }
   0xf   : > { %s1054_s19 = sshll.u32 %s1377_s18, 4 }
  0x10   : > { %s1292_s22 = scalar_lea.vmem %s1368_s0, %s1054_s19 }
  0x11   : > { %v1201_v2 = vld [vmem:[%s1292_s22] sm:$0xff]   ;;  %v1202_v3 = vld [vmem:[%s1292_s22 + $0x8] sm:$0xff]   ;;  %v1203_v4 = vld [vmem:[%s1292_s22 + $0x10] sm:$0xff]  }
  0x12   : > { %1107 = vmatprep.mubr.msk.bf16.mxu0 %vm319_vm1, %v1201_v2  ;;  %v1204_v5 = vld [vmem:[%s1292_s22 + $0x18] sm:$0xff]   ;;  %v1205_v6 = vld [vmem:[%s1292_s22 + $0x20] sm:$0xff]   ;;  %v1206_v7 = vld [vmem:[%s1292_s22 + $0x28] sm:$0xff]  }
  0x13   : > { %1108 = vmatmul.mubr.msk.bf16.vlgmr.msra.gmra.mrb[0].mxu0 %vm319_vm1, %v1202_v3  ;;  %v1207_v8 = vld [vmem:[%s1292_s22 + $0x30] sm:$0xff]   ;;  %v1208_v9 = vld [vmem:[%s1292_s22 + $0x38] sm:$0xff]   ;;  %v1209_v10 = vld [vmem:[%s1292_s22 + $0x40] sm:$0xff]  }
  0x14   : > { %1111 = vmatprep.mubr.msk.bf16.mxu0 %vm319_vm1, %v1203_v4  ;;  %v1210_v11 = vld [vmem:[%s1292_s22 + $0x48] sm:$0xff]   ;;  %v1211_v12 = vld [vmem:[%s1292_s22 + $0x50] sm:$0xff]   ;;  %v1212_v13 = vld [vmem:[%s1292_s22 + $0x58] sm:$0xff]  }
  0x15   : > { %v1213_v14 = vld [vmem:[%s1292_s22 + $0x60] sm:$0xff]   ;;  %v1214_v15 = vld [vmem:[%s1292_s22 + $0x68] sm:$0xff]   ;;  %v1215_v16 = vld [vmem:[%s1292_s22 + $0x70] sm:$0xff]  }
  0x16   : > { %v1216_v17 = vld [vmem:[%s1292_s22 + $0x78] sm:$0xff]  }
  0x1b   : > { %1112 = vmatmul.mubr.msk.bf16.gmra.mrb[4].mxu0 %vm319_vm1, %v1204_v5 }
  0x1c   : > { %1115 = vmatprep.mubr.msk.bf16.mxu0 %vm319_vm1, %v1205_v6 }
  0x23   : > { %1116 = vmatmul.mubr.msk.bf16.gmra.mrb[8].mxu0 %vm319_vm1, %v1206_v7 }
  0x24   : > { %1119 = vmatprep.mubr.msk.bf16.mxu0 %vm319_vm1, %v1207_v8 }
  0x2b   : > { %1120 = vmatmul.mubr.msk.bf16.gmra.mrb[12].mxu0 %vm319_vm1, %v1208_v9 }
  0x2c   : > { %1123 = vmatprep.mubr.msk.bf16.mxu0 %vm319_vm1, %v1209_v10 }
  0x33   : > { %1124 = vmatmul.mubr.msk.bf16.gmra.mrb[16].mxu0 %vm319_vm1, %v1210_v11 }
  0x34   : > { %1127 = vmatprep.mubr.msk.bf16.mxu0 %vm319_vm1, %v1211_v12 }
  0x3b   : > { %1128 = vmatmul.mubr.msk.bf16.gmra.mrb[20].mxu0 %vm319_vm1, %v1212_v13 }
  0x3c   : > { %1131 = vmatprep.mubr.msk.bf16.mxu0 %vm319_vm1, %v1213_v14 }
  0x43   : > { %1132 = vmatmul.mubr.msk.bf16.gmra.mrb[24].mxu0 %vm319_vm1, %v1214_v15 }
  0x44   : > { %1135 = vmatprep.mubr.msk.bf16.mxu0 %vm319_vm1, %v1215_v16 }
  0x4b   : > { %1136 = vmatmul.mubr.msk.bf16.gmra.mrb[28].mxu0 %vm319_vm1, %v1216_v17 }
  0xe6   : > { %v1109_v21 = vpop.f32.mrb[0].mxu0 }
  0xe7   : > { %v406_v22 = vpop.f32.mrb[1].mxu0  ;;  %v535_v24 = vmax.f32 %v1109_v21, 0.0 }
  0xe8   : > { %v1110_v23 = vpop.f32.mrb[2].mxu0  ;;  %v533_v27 = vmax.f32 %v406_v22, 0.0 }
  0xe9   : > { %v536_v25 = vmax.f32 %v1110_v23, 0.0  ;;  %v409_v26 = vpop.f32.mrb[3].mxu0 }
  0xea   : > { %v534_v28 = vmax.f32 %v409_v26, 0.0 }
  0xeb   : > { %v566_v29 = vpack.c.bf16 %v536_v25, %v535_v24 }
  0xec   : > { %v565_v30 = vpack.c.bf16 %v534_v28, %v533_v27 }
  0xee   : > { %v1113_v31 = vpop.f32.mrb[4].mxu0  ;;  %1143 = vmatprep.mubr.msk.bf16.mxu1 %vm593_vm2, %v565_v30 }
  0xef   : > { %v422_v32 = vpop.f32.mrb[5].mxu0  ;;  %1144 = vmatmul.mubr.msk.bf16.vlgmr.msra.gmra.mrb[0].mxu1 %vm593_vm2, %v566_v29  ;;  %v539_v34 = vmax.f32 %v1113_v31, 0.0 }
  0xf0   : > { %v1114_v33 = vpop.f32.mrb[6].mxu0  ;;  %v537_v37 = vmax.f32 %v422_v32, 0.0 }
  0xf1   : > { %v540_v35 = vmax.f32 %v1114_v33, 0.0  ;;  %v425_v36 = vpop.f32.mrb[7].mxu0 }
  0xf2   : > { %v538_v38 = vmax.f32 %v425_v36, 0.0 }
  0xf3   : > { %v568_v39 = vpack.c.bf16 %v540_v35, %v539_v34 }
  0xf4   : > { %v567_v40 = vpack.c.bf16 %v538_v38, %v537_v37 }
  0xf6   : > { %v1117_v41 = vpop.f32.mrb[8].mxu0  ;;  %1147 = vmatprep.mubr.msk.bf16.mxu1 %vm593_vm2, %v567_v40 }
  0xf7   : > { %v438_v42 = vpop.f32.mrb[9].mxu0  ;;  %1148 = vmatmul.mubr.msk.bf16.gmra.mrb[4].mxu1 %vm593_vm2, %v568_v39  ;;  %v543_v44 = vmax.f32 %v1117_v41, 0.0 }
  0xf8   : > { %v1118_v43 = vpop.f32.mrb[10].mxu0  ;;  %v541_v47 = vmax.f32 %v438_v42, 0.0 }
  0xf9   : > { %v544_v45 = vmax.f32 %v1118_v43, 0.0  ;;  %v441_v46 = vpop.f32.mrb[11].mxu0 }
  0xfa   : > { %v542_v48 = vmax.f32 %v441_v46, 0.0 }
  0xfb   : > { %v570_v49 = vpack.c.bf16 %v544_v45, %v543_v44 }
  0xfc   : > { %v569_v50 = vpack.c.bf16 %v542_v48, %v541_v47 }
  0xfe   : > { %v1121_v51 = vpop.f32.mrb[12].mxu0  ;;  %1151 = vmatprep.mubr.msk.bf16.mxu1 %vm593_vm2, %v569_v50 }
  0xff   : > { %v454_v52 = vpop.f32.mrb[13].mxu0  ;;  %1152 = vmatmul.mubr.msk.bf16.gmra.mrb[8].mxu1 %vm593_vm2, %v570_v49  ;;  %v547_v54 = vmax.f32 %v1121_v51, 0.0 }
 0x100   : > { %v1122_v53 = vpop.f32.mrb[14].mxu0  ;;  %v545_v57 = vmax.f32 %v454_v52, 0.0 }
 0x101   : > { %v548_v55 = vmax.f32 %v1122_v53, 0.0  ;;  %v457_v56 = vpop.f32.mrb[15].mxu0 }
 0x102   : > { %v546_v58 = vmax.f32 %v457_v56, 0.0 }
 0x103   : > { %v572_v59 = vpack.c.bf16 %v548_v55, %v547_v54 }
 0x104   : > { %v571_v60 = vpack.c.bf16 %v546_v58, %v545_v57 }
 0x106   : > { %v1125_v61 = vpop.f32.mrb[16].mxu0  ;;  %1155 = vmatprep.mubr.msk.bf16.mxu1 %vm593_vm2, %v571_v60 }
 0x107   : > { %v470_v62 = vpop.f32.mrb[17].mxu0  ;;  %1156 = vmatmul.mubr.msk.bf16.gmra.mrb[12].mxu1 %vm593_vm2, %v572_v59  ;;  %v551_v0 = vmax.f32 %v1125_v61, 0.0 }
 0x108   : > { %v1126_v63 = vpop.f32.mrb[18].mxu0  ;;  %v549_v3 = vmax.f32 %v470_v62, 0.0 }
 0x109   : > { %v552_v1 = vmax.f32 %v1126_v63, 0.0  ;;  %v473_v2 = vpop.f32.mrb[19].mxu0 }
 0x10a   : > { %v550_v4 = vmax.f32 %v473_v2, 0.0 }
 0x10b   : > { %v574_v5 = vpack.c.bf16 %v552_v1, %v551_v0 }
 0x10c   : > { %v573_v6 = vpack.c.bf16 %v550_v4, %v549_v3 }
 0x10e   : > { %v1129_v7 = vpop.f32.mrb[20].mxu0  ;;  %1159 = vmatprep.mubr.msk.bf16.mxu1 %vm593_vm2, %v573_v6 }
 0x10f   : > { %v486_v8 = vpop.f32.mrb[21].mxu0  ;;  %1160 = vmatmul.mubr.msk.bf16.gmra.mrb[16].mxu1 %vm593_vm2, %v574_v5  ;;  %v555_v10 = vmax.f32 %v1129_v7, 0.0 }
 0x110   : > { %v1130_v9 = vpop.f32.mrb[22].mxu0  ;;  %v553_v13 = vmax.f32 %v486_v8, 0.0 }
 0x111   : > { %v556_v11 = vmax.f32 %v1130_v9, 0.0  ;;  %v489_v12 = vpop.f32.mrb[23].mxu0 }
 0x112   : > { %v554_v14 = vmax.f32 %v489_v12, 0.0 }
 0x113   : > { %v576_v15 = vpack.c.bf16 %v556_v11, %v555_v10 }
 0x114   : > { %v575_v16 = vpack.c.bf16 %v554_v14, %v553_v13 }
 0x116   : > { %v1133_v17 = vpop.f32.mrb[24].mxu0  ;;  %1163 = vmatprep.mubr.msk.bf16.mxu1 %vm593_vm2, %v575_v16 }
 0x117   : > { %v502_v18 = vpop.f32.mrb[25].mxu0  ;;  %1164 = vmatmul.mubr.msk.bf16.gmra.mrb[20].mxu1 %vm593_vm2, %v576_v15  ;;  %v559_v20 = vmax.f32 %v1133_v17, 0.0 }
 0x118   : > { %v1134_v19 = vpop.f32.mrb[26].mxu0  ;;  %v557_v23 = vmax.f32 %v502_v18, 0.0 }
 0x119   : > { %v560_v21 = vmax.f32 %v1134_v19, 0.0  ;;  %v505_v22 = vpop.f32.mrb[27].mxu0 }
 0x11a   : > { %v558_v24 = vmax.f32 %v505_v22, 0.0 }
 0x11b   : > { %v578_v25 = vpack.c.bf16 %v560_v21, %v559_v20 }
 0x11c   : > { %v577_v26 = vpack.c.bf16 %v558_v24, %v557_v23 }
 0x11e   : > { %v1137_v27 = vpop.f32.mrb[28].mxu0  ;;  %1167 = vmatprep.mubr.msk.bf16.mxu1 %vm593_vm2, %v577_v26 }
 0x11f   : > { %v518_v28 = vpop.f32.mrb[29].mxu0  ;;  %1168 = vmatmul.mubr.msk.bf16.gmra.mrb[24].mxu1 %vm593_vm2, %v578_v25  ;;  %v563_v30 = vmax.f32 %v1137_v27, 0.0 }
 0x120   : > { %v1138_v29 = vpop.f32.mrb[30].mxu0  ;;  %v561_v33 = vmax.f32 %v518_v28, 0.0 }
 0x121   : > { %v564_v31 = vmax.f32 %v1138_v29, 0.0  ;;  %v521_v32 = vpop.f32.mrb[31].mxu0 }
 0x122   : > { %v562_v34 = vmax.f32 %v521_v32, 0.0 }
 0x123   : > { %v580_v35 = vpack.c.bf16 %v564_v31, %v563_v30 }
 0x124   : > { %v579_v36 = vpack.c.bf16 %v562_v34, %v561_v33 }
 0x126   : > { %1171 = vmatprep.mubr.msk.bf16.mxu1 %vm593_vm2, %v579_v36 }
 0x127   : > { %1172 = vmatmul.mubr.msk.bf16.gmra.mrb[28].mxu1 %vm593_vm2, %v580_v35 }
 0x1c2   : > { %v1145_v37 = vpop.f32.mrb[0].mxu1 }
 0x1c3   : > { %v679_v38 = vpop.f32.mrb[1].mxu1  ;;  %v808_v42 = vmax.f32 %v1145_v37, 0.0 }
 0x1c4   : > { %v1146_v39 = vpop.f32.mrb[2].mxu1  ;;  %v806_v45 = vmax.f32 %v679_v38, 0.0 }
 0x1c5   : > { %v682_v40 = vpop.f32.mrb[3].mxu1  ;;  %v809_v48 = vmax.f32 %v1146_v39, 0.0 }
 0x1c6   : > { %v807_v52 = vmax.f32 %v682_v40, 0.0 }
 0x1ca   : > { %v1149_v41 = vpop.f32.mrb[4].mxu1 }
 0x1cb   : > { %v812_v43 = vmax.f32 %v1149_v41, 0.0  ;;  %v695_v44 = vpop.f32.mrb[5].mxu1 }
 0x1cc   : > { %v810_v46 = vmax.f32 %v695_v44, 0.0  ;;  %v1150_v47 = vpop.f32.mrb[6].mxu1 }
 0x1cd   : > { %v840_v49 = vmax.f32 %v808_v42, %v812_v43  ;;  %v813_v50 = vmax.f32 %v1150_v47, 0.0  ;;  %v698_v51 = vpop.f32.mrb[7].mxu1 }
 0x1ce   : > { %v838_v53 = vmax.f32 %v806_v45, %v810_v46  ;;  %v811_v54 = vmax.f32 %v698_v51, 0.0 }
 0x1cf   : > { %v841_v55 = vmax.f32 %v809_v48, %v813_v50 }
 0x1d0   : > { %v839_v56 = vmax.f32 %v807_v52, %v811_v54 }
 0x1d2   : > { %v1153_v57 = vpop.f32.mrb[8].mxu1 }
 0x1d3   : > { %v816_v58 = vmax.f32 %v1153_v57, 0.0  ;;  %v711_v59 = vpop.f32.mrb[9].mxu1 }
 0x1d4   : > { %v814_v60 = vmax.f32 %v711_v59, 0.0  ;;  %v1154_v61 = vpop.f32.mrb[10].mxu1 }
 0x1d5   : > { %v844_v62 = vmax.f32 %v840_v49, %v816_v58  ;;  %v817_v63 = vmax.f32 %v1154_v61, 0.0  ;;  %v714_v0 = vpop.f32.mrb[11].mxu1 }
 0x1d6   : > { %v842_v1 = vmax.f32 %v838_v53, %v814_v60  ;;  %v815_v2 = vmax.f32 %v714_v0, 0.0 }
 0x1d7   : > { %v845_v3 = vmax.f32 %v841_v55, %v817_v63 }
 0x1d8   : > { %v843_v4 = vmax.f32 %v839_v56, %v815_v2 }
 0x1da   : > { %v1157_v5 = vpop.f32.mrb[12].mxu1 }
 0x1db   : > { %v820_v6 = vmax.f32 %v1157_v5, 0.0  ;;  %v727_v7 = vpop.f32.mrb[13].mxu1 }
 0x1dc   : > { %v818_v8 = vmax.f32 %v727_v7, 0.0  ;;  %v1158_v9 = vpop.f32.mrb[14].mxu1 }
 0x1dd   : > { %v848_v10 = vmax.f32 %v844_v62, %v820_v6  ;;  %v821_v11 = vmax.f32 %v1158_v9, 0.0  ;;  %v730_v12 = vpop.f32.mrb[15].mxu1 }
 0x1de   : > { %v846_v13 = vmax.f32 %v842_v1, %v818_v8  ;;  %v819_v14 = vmax.f32 %v730_v12, 0.0 }
 0x1df   : > { %v849_v15 = vmax.f32 %v845_v3, %v821_v11 }
 0x1e0   : > { %v847_v16 = vmax.f32 %v843_v4, %v819_v14 }
 0x1e2   : > { %v1161_v17 = vpop.f32.mrb[16].mxu1 }
 0x1e3   : > { %v824_v18 = vmax.f32 %v1161_v17, 0.0  ;;  %v743_v19 = vpop.f32.mrb[17].mxu1 }
 0x1e4   : > { %v822_v20 = vmax.f32 %v743_v19, 0.0  ;;  %v1162_v21 = vpop.f32.mrb[18].mxu1 }
 0x1e5   : > { %v852_v22 = vmax.f32 %v848_v10, %v824_v18  ;;  %v825_v23 = vmax.f32 %v1162_v21, 0.0  ;;  %v746_v24 = vpop.f32.mrb[19].mxu1 }
 0x1e6   : > { %v850_v25 = vmax.f32 %v846_v13, %v822_v20  ;;  %v823_v26 = vmax.f32 %v746_v24, 0.0 }
 0x1e7   : > { %v853_v27 = vmax.f32 %v849_v15, %v825_v23 }
 0x1e8   : > { %v851_v28 = vmax.f32 %v847_v16, %v823_v26 }
 0x1ea   : > { %v1165_v29 = vpop.f32.mrb[20].mxu1 }
 0x1eb   : > { %v828_v30 = vmax.f32 %v1165_v29, 0.0  ;;  %v759_v31 = vpop.f32.mrb[21].mxu1 }
 0x1ec   : > { %v826_v32 = vmax.f32 %v759_v31, 0.0  ;;  %v1166_v33 = vpop.f32.mrb[22].mxu1 }
 0x1ed   : > { %v856_v34 = vmax.f32 %v852_v22, %v828_v30  ;;  %v829_v35 = vmax.f32 %v1166_v33, 0.0  ;;  %v762_v36 = vpop.f32.mrb[23].mxu1 }
 0x1ee   : > { %v854_v37 = vmax.f32 %v850_v25, %v826_v32  ;;  %v827_v38 = vmax.f32 %v762_v36, 0.0 }
 0x1ef   : > { %v857_v39 = vmax.f32 %v853_v27, %v829_v35 }
 0x1f0   : > { %v855_v40 = vmax.f32 %v851_v28, %v827_v38 }
 0x1f2   : > { %v1169_v41 = vpop.f32.mrb[24].mxu1 }
 0x1f3   : > { %v832_v42 = vmax.f32 %v1169_v41, 0.0  ;;  %v775_v43 = vpop.f32.mrb[25].mxu1 }
 0x1f4   : > { %v830_v44 = vmax.f32 %v775_v43, 0.0  ;;  %v1170_v45 = vpop.f32.mrb[26].mxu1 }
 0x1f5   : > { %v860_v46 = vmax.f32 %v856_v34, %v832_v42  ;;  %v833_v47 = vmax.f32 %v1170_v45, 0.0  ;;  %v778_v48 = vpop.f32.mrb[27].mxu1 }
 0x1f6   : > { %v858_v49 = vmax.f32 %v854_v37, %v830_v44  ;;  %v831_v50 = vmax.f32 %v778_v48, 0.0 }
 0x1f7   : > { %v861_v51 = vmax.f32 %v857_v39, %v833_v47 }
 0x1f8   : > { %v859_v52 = vmax.f32 %v855_v40, %v831_v50 }
 0x1fa   : > { %v1173_v53 = vpop.f32.mrb[28].mxu1  ;;  %869 = sbr.rel (%p1043_p5) target bundleno = 515 (0x203), region = 36 }
 0x1fb   : > { %v836_v54 = vmax.f32 %v1173_v53, 0.0  ;;  %v791_v55 = vpop.f32.mrb[29].mxu1 }
 0x1fc   : > { %v834_v56 = vmax.f32 %v791_v55, 0.0  ;;  %v1174_v57 = vpop.f32.mrb[30].mxu1 }
 0x1fd   : > { %v864_v58 = vmax.f32 %v860_v46, %v836_v54  ;;  %v837_v59 = vmax.f32 %v1174_v57, 0.0  ;;  %v794_v60 = vpop.f32.mrb[31].mxu1 }
 0x1fe   : > { %v862_v61 = vmax.f32 %v858_v49, %v834_v56  ;;  %v835_v62 = vmax.f32 %v794_v60, 0.0 }
 0x1ff   : > { %v865_v63 = vmax.f32 %v861_v51, %v837_v59  ;;  %872 = vst [vmem:[#allocation2 + $0x10] sm:$0xff] (!%p1043_p5), %v864_v58 }
 0x200   : > { %v863_v0 = vmax.f32 %v859_v52, %v835_v62  ;;  %870 = vst [vmem:[#allocation2] sm:$0xff] (!%p1043_p5), %v862_v61 }
 0x201   : > { %873 = vst [vmem:[#allocation2 + $0x18] sm:$0xff] %v865_v63 }
 0x202   : > { %871 = vst [vmem:[#allocation2 + $0x8] sm:$0xff] %v863_v0 }
 0x203 PF: > { %p1044_p6 = scmp.eq.s32.totalorder %s1233_s12, 0 }
 0x205   : > { %877 = sbr.rel (%p1044_p6) target bundleno = 526 (0x20e), region = 40 }
 0x208   : > { %v880_v3 = vld [vmem:[#allocation2 + $0x10] sm:$0xff] (!%p1044_p6) }
 0x209   : > { %v878_v1 = vld [vmem:[#allocation2] sm:$0xff] (!%p1044_p6)  ;;  %v879_v2 = vld [vmem:[#allocation2 + $0x8] sm:$0xff] (!%p1044_p6)  ;;  %v884_v6 = vmax.f32 (!%p1044_p6), %v880_v3, %v864_v58 }
 0x20a   : > { %v882_v4 = vmax.f32 (!%p1044_p6), %v878_v1, %v862_v61  ;;  %v883_v5 = vmax.f32 (!%p1044_p6), %v879_v2, %v863_v0  ;;  %v881_v7 = vld [vmem:[#allocation2 + $0x18] sm:$0xff] (!%p1044_p6) }
 0x20b   : > { %v885_v8 = vmax.f32 (!%p1044_p6), %v881_v7, %v865_v63  ;;  %888 = vst [vmem:[#allocation2 + $0x10] sm:$0xff] (!%p1044_p6), %v884_v6 }
 0x20c   : > { %886 = vst [vmem:[#allocation2] sm:$0xff] %v882_v4  ;;  %887 = vst [vmem:[#allocation2 + $0x8] sm:$0xff] %v883_v5 }
 0x20d   : > { %889 = vst [vmem:[#allocation2 + $0x18] sm:$0xff] %v885_v8 }
 0x20e PF: > { %p1045_p7 = scmp.ne.s32.totalorder %s1233_s12, 1 }
 0x210   : > { %893 = sbr.rel (%p1045_p7) target bundleno = 537 (0x219), region = 44 }
 0x214   : > { %v896_v11 = vld [vmem:[#allocation2 + $0x10] sm:$0xff] (!%p1045_p7)  ;;  %v897_v13 = vld [vmem:[#allocation2 + $0x18] sm:$0xff] (!%p1045_p7) }
 0x215   : > { %v894_v9 = vld [vmem:[#allocation2] sm:$0xff] (!%p1045_p7)  ;;  %v895_v10 = vld [vmem:[#allocation2 + $0x8] sm:$0xff] (!%p1045_p7)  ;;  %v1067_v14 = vpack.c.bf16 (!%p1045_p7), %v897_v13, %v896_v11 }
 0x216   : > { %v1062_v12 = vpack.c.bf16 (!%p1045_p7), %v895_v10, %v894_v9 }
 0x217   : > { %1069 = vst [vmem:[%s1371_s3 + $0x8] sm:$0xff] %v1067_v14  }
 0x218   : > { %1063 = vst [vmem:[%s1371_s3] sm:$0xff] %v1062_v12  }
 0x219 PF: > { %s13_s14 = sadd.s32 1, %s1241_s14   ;;  %s1372_s12 = smov %s1237_s13 }
 0x21a   : > { %p10_p8 = scmp.ge.s32.totalorder %s13_s14, 4   ;;  %s1373_s13 = smov %s1375_s15 }
 0x21c   :  { %12 = sbr.rel (!%p10_p8) target bundleno = 2 (0x2), region = 74 }

</bundles_post_ra>
